<compile_context>
chip_gen: v7x
topology: tpu7x:2x2x1
jax: 0.10.0
libtpu: 0.0.40
codegen_flags: <defaults>
</compile_context>

<pallas_src>
import jax
import jax.numpy as jnp
from jax.experimental import pallas as pl
from jax.experimental.pallas import tpu as pltpu

_LANE = 128
_SUBLANE = 8


def _round_up(n, m):
    return ((n + m - 1) // m) * m


def _pad2(a, rows, cols):
    return jnp.pad(a, ((0, rows - a.shape[0]), (0, cols - a.shape[1])))


# --------------------------------------------------------------------------------------
# Kernel body: one batch tile, whole (padded) weights resident in VMEM.
# --------------------------------------------------------------------------------------
def _bernoulli_fc_kernel(x_ref, w1_ref, b1_ref, w2_ref, b2_ref, wp_ref, bp_ref, out_ref):
    # In-kernel f32 -> bf16 cast of the activation tile (avoids a wrapper-side HBM pass).
    x = x_ref[...].astype(jnp.bfloat16)
    # Hidden layer 1: bf16 MXU with f32 accumulation, bias + ReLU in f32.
    h = jnp.dot(x, w1_ref[...], preferred_element_type=jnp.float32)
    h = jnp.maximum(h + b1_ref[...], 0.0)
    # Hidden layer 2.
    h = jnp.dot(h.astype(jnp.bfloat16), w2_ref[...], preferred_element_type=jnp.float32)
    h = jnp.maximum(h + b2_ref[...], 0.0)
    # Output head.
    p = jnp.dot(h.astype(jnp.bfloat16), wp_ref[...], preferred_element_type=jnp.float32)
    p = p + bp_ref[...]
    # sigmoid(p) = 0.5 * tanh(0.5 * p) + 0.5  -> single EUP transcendental.
    out_ref[...] = (0.5 * jnp.tanh(0.5 * p) + 0.5).astype(out_ref.dtype)


# --------------------------------------------------------------------------------------
# One-time (model load) parameter prep: lane-pad feature dims, cast weights to bf16.
# Zero padding is exact: padded hidden units get bias 0 -> relu(0)=0, padded weight
# rows are 0, padded output lanes are sliced off after the kernel.
# --------------------------------------------------------------------------------------
def prepare_params(params):
    in_dim, h1 = params["w1"].shape
    h2 = params["w2"].shape[1]
    out_dim = params["wp"].shape[1]
    h1_p = _round_up(h1, _LANE)
    h2_p = _round_up(h2, _LANE)
    out_p = _round_up(out_dim, _LANE)
    prepped = {
        "w1": _pad2(params["w1"], in_dim, h1_p).astype(jnp.bfloat16),
        "b1": _pad2(params["b1"], 1, h1_p).astype(jnp.float32),
        "w2": _pad2(params["w2"], h1_p, h2_p).astype(jnp.bfloat16),
        "b2": _pad2(params["b2"], 1, h2_p).astype(jnp.float32),
        "wp": _pad2(params["wp"], h2_p, out_p).astype(jnp.bfloat16),
        "bp": _pad2(params["bp"], 1, out_p).astype(jnp.float32),
    }
    meta = {"in_dim": in_dim, "out_dim": out_dim,
            "h1_p": h1_p, "h2_p": h2_p, "out_p": out_p}
    return prepped, meta


def _choose_batch_tile(B, in_dim, h1_p, h2_p, out_p, max_batch_tile):
    """Pick the batch tile from a VMEM budget; prefer >=2 grid programs (v7x megacore)."""
    # Resident weights + biases (single-buffered assumption for the budget check).
    weight_bytes = 2 * (in_dim * h1_p + h1_p * h2_p + h2_p * out_p) \
                   + 4 * (h1_p + h2_p + out_p)
    budget = 48 * 1024 * 1024  # conservative: leaves headroom even on v7x's 64 MiB / TC
    b_r = _round_up(B, _SUBLANE)
    bt = min(_round_up(max_batch_tile, _SUBLANE), b_r)
    while bt > _SUBLANE:
        per_tile = (2 * bt * in_dim * 4          # double-buffered x tile (f32)
                    + 2 * bt * out_p * 4         # double-buffered out tile
                    + bt * (h1_p + h2_p) * 4)    # f32 hidden intermediates
        if weight_bytes + per_tile <= budget:
            break
        bt = _round_up(bt // 2, _SUBLANE)
    bt = max(bt, _SUBLANE)
    # Cap so the batch grid has >=2 programs whenever the batch allows it.
    if b_r >= 2 * _SUBLANE:
        bt = min(bt, _round_up((b_r + 1) // 2, _SUBLANE))
    return bt


def _make_specs(in_dim, h1_p, h2_p, out_p, bt, weight_buffer_count):
    if weight_buffer_count is None:
        def wspec(shape):
            return pl.BlockSpec(shape, lambda i: (0, 0))
    else:
        wmode = pl.Buffered(weight_buffer_count)
        def wspec(shape):
            return pl.BlockSpec(shape, lambda i: (0, 0), pipeline_mode=wmode)
    in_specs = [
        pl.BlockSpec((bt, in_dim), lambda i: (i, 0)),   # x batch tile (f32, cast in kernel)
        wspec((in_dim, h1_p)), wspec((1, h1_p)),        # w1, b1 (constant index -> resident)
        wspec((h1_p, h2_p)), wspec((1, h2_p)),          # w2, b2
        wspec((h2_p, out_p)), wspec((1, out_p)),        # wp, bp
    ]
    out_specs = pl.BlockSpec((bt, out_p), lambda i: (i, 0))  # lane-dense output tile
    return in_specs, out_specs


def bernoulli_fc(x, prepped, meta, *, max_batch_tile=1024, out_dtype=jnp.float32):
    """Fused BernoulliFC forward.  `prepped`/`meta` come from prepare_params (one-time)."""
    B, in_dim = x.shape
    assert in_dim == meta["in_dim"], "input feature dim mismatch vs prepared params"
    h1_p, h2_p = meta["h1_p"], meta["h2_p"]
    out_p, out_dim = meta["out_p"], meta["out_dim"]

    bt = _choose_batch_tile(B, in_dim, h1_p, h2_p, out_p, max_batch_tile)
    Bp = _round_up(B, bt)

    x_f32 = x.astype(jnp.float32)
    if Bp != B:  # only pad the batch dim when the tile doesn't divide it
        x_f32 = jnp.pad(x_f32, ((0, Bp - B), (0, 0)))

    grid = (Bp // bt,)
    weight_args = (prepped["w1"], prepped["b1"], prepped["w2"], prepped["b2"],
                   prepped["wp"], prepped["bp"])
    weight_bytes = sum(int(a.size) * a.dtype.itemsize for a in weight_args)
    out_itemsize = jnp.dtype(out_dtype).itemsize

    flops = 2 * Bp * (in_dim * h1_p + h1_p * h2_p + h2_p * out_p)
    transcendentals = Bp * out_p
    bytes_accessed = Bp * in_dim * 4 + weight_bytes + Bp * out_p * out_itemsize

    last_err = None
    # Try single-buffered weights first (halves resident weight VMEM, matters most on v7x);
    # fall back to default double-buffering if this JAX build rejects Buffered(1).
    for wbuf in (1, None):
        try:
            in_specs, out_specs = _make_specs(in_dim, h1_p, h2_p, out_p, bt, wbuf)
            n_weight_bufs = 1 if wbuf == 1 else 2
            need = (n_weight_bufs * weight_bytes
                    + 2 * bt * in_dim * 4
                    + 2 * bt * out_p * out_itemsize
                    + bt * (h1_p + h2_p) * 4)
            vmem_limit = int(min(max(need + (8 << 20), 32 << 20), 100 << 20))
            out = pl.pallas_call(
                _bernoulli_fc_kernel,
                out_shape=jax.ShapeDtypeStruct((Bp, out_p), out_dtype),
                grid=grid,
                in_specs=in_specs,
                out_specs=out_specs,
                compiler_params=pltpu.CompilerParams(
                    dimension_semantics=("parallel",),
                    vmem_limit_bytes=vmem_limit),
                cost_estimate=pl.CostEstimate(
                    flops=flops,
                    transcendentals=transcendentals,
                    bytes_accessed=bytes_accessed),
            )(x_f32, *weight_args)
            return out[:B, :out_dim]
        except Exception as e:  # noqa: BLE001 - retry once without single-buffering
            last_err = e
            continue
    raise last_err


# --------------------------------------------------------------------------------------
# Synthetic init + references.
# --------------------------------------------------------------------------------------
def init_params(key, in_dim, layer_dims, out_dim):
    """Deterministic synthetic init matching BernoulliFC.__init__ shapes (stored as W^T)."""
    dims = [in_dim] + layer_dims
    keys = jax.random.split(key, 2 * len(layer_dims) + 2)
    params = {}
    for idx, (din, dout) in enumerate(zip(dims[:-1], dims[1:])):
        scale = 1.0 / jnp.sqrt(din)
        params[f"w{idx + 1}"] = scale * jax.random.normal(keys[2 * idx], (din, dout), jnp.float32)
        params[f"b{idx + 1}"] = scale * jax.random.normal(keys[2 * idx + 1], (1, dout), jnp.float32)
    din = dims[-1]
    scale = 1.0 / jnp.sqrt(din)
    params["wp"] = scale * jax.random.normal(keys[-2], (din, out_dim), jnp.float32)
    params["bp"] = scale * jax.random.normal(keys[-1], (1, out_dim), jnp.float32)
    return params


def reference_forward_f32(x, params):
    h = jnp.maximum(x @ params["w1"] + params["b1"], 0.0)
    h = jnp.maximum(h @ params["w2"] + params["b2"], 0.0)
    return jax.nn.sigmoid(h @ params["wp"] + params["bp"])


def reference_forward_bf16(x, params):
    """Reference mirroring the kernel's bf16-input / f32-accumulate matmuls."""
    def mm(a, w):
        return jnp.dot(a.astype(jnp.bfloat16), w.astype(jnp.bfloat16),
                       preferred_element_type=jnp.float32)
    h = jnp.maximum(mm(x, params["w1"]) + params["b1"], 0.0)
    h = jnp.maximum(mm(h, params["w2"]) + params["b2"], 0.0)
    return jax.nn.sigmoid(mm(h, params["wp"]) + params["bp"])


if __name__ == "__main__":
    key = jax.random.PRNGKey(0)
    kx, kp = jax.random.split(key)

    batch, in_dim, layer_dims, out_dim = 16, 32, [64, 32], 16
    x = jax.random.normal(kx, (batch, in_dim), jnp.float32)
    params = init_params(kp, in_dim, layer_dims, out_dim)

    # One-time (model load) prep, then the per-call forward.
    prepped, meta = prepare_params(params)
    out = bernoulli_fc(x, prepped, meta)
    out = jax.block_until_ready(out)
    assert out.shape == (batch, out_dim)

    ref_bf16 = reference_forward_bf16(x, params)
    ref_f32 = reference_forward_f32(x, params)
    assert jnp.allclose(out, ref_bf16, atol=5e-3, rtol=5e-3), "mismatch vs bf16 reference"
    assert jnp.allclose(out, ref_f32, atol=3e-2, rtol=3e-2), "mismatch vs f32 reference"

    print("KERNEL_OK")
</pallas_src>

<mosaic_0001>
module attributes {stable_mosaic.version = 11 : i64} {
  func.func @_bernoulli_fc_kernel(%arg0: i32, %arg1: memref<8x32xf32, #tpu.memory_space<vmem>>, %arg2: memref<32x128xbf16, #tpu.memory_space<vmem>>, %arg3: memref<1x128xf32, #tpu.memory_space<vmem>>, %arg4: memref<128x128xbf16, #tpu.memory_space<vmem>>, %arg5: memref<1x128xf32, #tpu.memory_space<vmem>>, %arg6: memref<128x128xbf16, #tpu.memory_space<vmem>>, %arg7: memref<1x128xf32, #tpu.memory_space<vmem>>, %arg8: memref<8x128xf32, #tpu.memory_space<vmem>>) attributes {dimension_semantics = [#tpu.dimension_semantics<parallel>], iteration_bounds = array<i64: 2>, scalar_prefetch = 0 : i64, scratch_operands = 0 : i64, tpu.core_type = #tpu.core_type<tc>, window_params = [{transform_indices = @transform_0, window_bounds = array<i64: 8, 32>}, {pipeline_mode = #tpu.pipeline_mode<synchronous>, transform_indices = @transform_1, window_bounds = array<i64: 32, 128>}, {pipeline_mode = #tpu.pipeline_mode<synchronous>, transform_indices = @transform_2, window_bounds = array<i64: 1, 128>}, {pipeline_mode = #tpu.pipeline_mode<synchronous>, transform_indices = @transform_3, window_bounds = array<i64: 128, 128>}, {pipeline_mode = #tpu.pipeline_mode<synchronous>, transform_indices = @transform_4, window_bounds = array<i64: 1, 128>}, {pipeline_mode = #tpu.pipeline_mode<synchronous>, transform_indices = @transform_5, window_bounds = array<i64: 128, 128>}, {pipeline_mode = #tpu.pipeline_mode<synchronous>, transform_indices = @transform_6, window_bounds = array<i64: 1, 128>}, {transform_indices = @transform_7, window_bounds = array<i64: 8, 128>}]} {
    %c0 = arith.constant 0 : index
    %c0_0 = arith.constant 0 : index
    %0 = vector.load %arg1[%c0, %c0_0] : memref<8x32xf32, #tpu.memory_space<vmem>>, vector<8x32xf32>
    %1 = arith.truncf %0 : vector<8x32xf32> to vector<8x32xbf16>
    %c0_1 = arith.constant 0 : index
    %c0_2 = arith.constant 0 : index
    %2 = vector.load %arg2[%c0_1, %c0_2] : memref<32x128xbf16, #tpu.memory_space<vmem>>, vector<32x128xbf16>
    %cst = arith.constant dense<0.000000e+00> : vector<8x128xf32>
    %3 = tpu.matmul %1, %2, %cst {dimension_numbers = #tpu.dot_dimension_numbers<[1], [0], [0], [1], [0, 0, 1, 1], [], []>} : vector<8x32xbf16>, vector<32x128xbf16>, vector<8x128xf32> -> vector<8x128xf32>
    %c0_3 = arith.constant 0 : index
    %c0_4 = arith.constant 0 : index
    %4 = vector.load %arg3[%c0_3, %c0_4] : memref<1x128xf32, #tpu.memory_space<vmem>>, vector<1x128xf32>
    %5 = vector.broadcast %4 : vector<1x128xf32> to vector<8x128xf32>
    %6 = arith.addf %3, %5 : vector<8x128xf32>
    %cst_5 = arith.constant 0.000000e+00 : f32
    %7 = vector.broadcast %cst_5 : f32 to vector<8x128xf32>
    %8 = arith.maximumf %6, %7 : vector<8x128xf32>
    %9 = arith.truncf %8 : vector<8x128xf32> to vector<8x128xbf16>
    %c0_6 = arith.constant 0 : index
    %c0_7 = arith.constant 0 : index
    %10 = vector.load %arg4[%c0_6, %c0_7] : memref<128x128xbf16, #tpu.memory_space<vmem>>, vector<128x128xbf16>
    %cst_8 = arith.constant dense<0.000000e+00> : vector<8x128xf32>
    %11 = tpu.matmul %9, %10, %cst_8 {dimension_numbers = #tpu.dot_dimension_numbers<[1], [0], [0], [1], [0, 0, 1, 1], [], []>} : vector<8x128xbf16>, vector<128x128xbf16>, vector<8x128xf32> -> vector<8x128xf32>
    %c0_9 = arith.constant 0 : index
    %c0_10 = arith.constant 0 : index
    %12 = vector.load %arg5[%c0_9, %c0_10] : memref<1x128xf32, #tpu.memory_space<vmem>>, vector<1x128xf32>
    %13 = vector.broadcast %12 : vector<1x128xf32> to vector<8x128xf32>
    %14 = arith.addf %11, %13 : vector<8x128xf32>
    %cst_11 = arith.constant 0.000000e+00 : f32
    %15 = vector.broadcast %cst_11 : f32 to vector<8x128xf32>
    %16 = arith.maximumf %14, %15 : vector<8x128xf32>
    %17 = arith.truncf %16 : vector<8x128xf32> to vector<8x128xbf16>
    %c0_12 = arith.constant 0 : index
    %c0_13 = arith.constant 0 : index
    %18 = vector.load %arg6[%c0_12, %c0_13] : memref<128x128xbf16, #tpu.memory_space<vmem>>, vector<128x128xbf16>
    %cst_14 = arith.constant dense<0.000000e+00> : vector<8x128xf32>
    %19 = tpu.matmul %17, %18, %cst_14 {dimension_numbers = #tpu.dot_dimension_numbers<[1], [0], [0], [1], [0, 0, 1, 1], [], []>} : vector<8x128xbf16>, vector<128x128xbf16>, vector<8x128xf32> -> vector<8x128xf32>
    %c0_15 = arith.constant 0 : index
    %c0_16 = arith.constant 0 : index
    %20 = vector.load %arg7[%c0_15, %c0_16] : memref<1x128xf32, #tpu.memory_space<vmem>>, vector<1x128xf32>
    %21 = vector.broadcast %20 : vector<1x128xf32> to vector<8x128xf32>
    %22 = arith.addf %19, %21 : vector<8x128xf32>
    %cst_17 = arith.constant 5.000000e-01 : f32
    %23 = vector.broadcast %cst_17 : f32 to vector<8x128xf32>
    %24 = arith.mulf %23, %22 : vector<8x128xf32>
    %25 = math.tanh %24 : vector<8x128xf32>
    %cst_18 = arith.constant 5.000000e-01 : f32
    %26 = vector.broadcast %cst_18 : f32 to vector<8x128xf32>
    %27 = arith.mulf %26, %25 : vector<8x128xf32>
    %cst_19 = arith.constant 5.000000e-01 : f32
    %28 = vector.broadcast %cst_19 : f32 to vector<8x128xf32>
    %29 = arith.addf %27, %28 : vector<8x128xf32>
    %c0_20 = arith.constant 0 : index
    %c0_21 = arith.constant 0 : index
    %30 = vector.load %arg8[%c0_20, %c0_21] : memref<8x128xf32, #tpu.memory_space<vmem>>, vector<8x128xf32>
    tpu.vector_store %arg8[%c0_20, %c0_21], %29 {strides = array<i32>} : memref<8x128xf32, #tpu.memory_space<vmem>>, vector<8x128xf32>,
    return
  }
  func.func @transform_0(%arg0: i32) -> (i32, i32) {
    %c0_i32 = arith.constant 0 : i32
    %c0_i32_0 = arith.constant 0 : i32
    return %arg0, %c0_i32 : i32, i32
  }
  func.func @transform_1(%arg0: i32) -> (i32, i32) {
    %c0_i32 = arith.constant 0 : i32
    %c0_i32_0 = arith.constant 0 : i32
    %c0_i32_1 = arith.constant 0 : i32
    return %c0_i32, %c0_i32_0 : i32, i32
  }
  func.func @transform_2(%arg0: i32) -> (i32, i32) {
    %c0_i32 = arith.constant 0 : i32
    %c0_i32_0 = arith.constant 0 : i32
    %c0_i32_1 = arith.constant 0 : i32
    return %c0_i32, %c0_i32_0 : i32, i32
  }
  func.func @transform_3(%arg0: i32) -> (i32, i32) {
    %c0_i32 = arith.constant 0 : i32
    %c0_i32_0 = arith.constant 0 : i32
    %c0_i32_1 = arith.constant 0 : i32
    return %c0_i32, %c0_i32_0 : i32, i32
  }
  func.func @transform_4(%arg0: i32) -> (i32, i32) {
    %c0_i32 = arith.constant 0 : i32
    %c0_i32_0 = arith.constant 0 : i32
    %c0_i32_1 = arith.constant 0 : i32
    return %c0_i32, %c0_i32_0 : i32, i32
  }
  func.func @transform_5(%arg0: i32) -> (i32, i32) {
    %c0_i32 = arith.constant 0 : i32
    %c0_i32_0 = arith.constant 0 : i32
    %c0_i32_1 = arith.constant 0 : i32
    return %c0_i32, %c0_i32_0 : i32, i32
  }
  func.func @transform_6(%arg0: i32) -> (i32, i32) {
    %c0_i32 = arith.constant 0 : i32
    %c0_i32_0 = arith.constant 0 : i32
    %c0_i32_1 = arith.constant 0 : i32
    return %c0_i32, %c0_i32_0 : i32, i32
  }
  func.func @transform_7(%arg0: i32) -> (i32, i32) {
    %c0_i32 = arith.constant 0 : i32
    %c0_i32_0 = arith.constant 0 : i32
    return %arg0, %c0_i32 : i32, i32
  }
}

module attributes {stable_mosaic.version = 11 : i64} {
  func.func @_bernoulli_fc_kernel(%arg0: i32, %arg1: memref<8x32xf32, #tpu.memory_space<vmem>>, %arg2: memref<32x128xbf16, #tpu.memory_space<vmem>>, %arg3: memref<1x128xf32, #tpu.memory_space<vmem>>, %arg4: memref<128x128xbf16, #tpu.memory_space<vmem>>, %arg5: memref<1x128xf32, #tpu.memory_space<vmem>>, %arg6: memref<128x128xbf16, #tpu.memory_space<vmem>>, %arg7: memref<1x128xf32, #tpu.memory_space<vmem>>, %arg8: memref<8x128xf32, #tpu.memory_space<vmem>>) attributes {dimension_semantics = [#tpu.dimension_semantics<parallel>], iteration_bounds = array<i64: 2>, scalar_prefetch = 0 : i64, scratch_operands = 0 : i64, tpu.core_type = #tpu.core_type<tc>, window_params = [{transform_indices = @transform_0, window_bounds = array<i64: 8, 32>}, {pipeline_mode = #tpu.pipeline_mode<synchronous>, transform_indices = @transform_1, window_bounds = array<i64: 32, 128>}, {pipeline_mode = #tpu.pipeline_mode<synchronous>, transform_indices = @transform_2, window_bounds = array<i64: 1, 128>}, {pipeline_mode = #tpu.pipeline_mode<synchronous>, transform_indices = @transform_3, window_bounds = array<i64: 128, 128>}, {pipeline_mode = #tpu.pipeline_mode<synchronous>, transform_indices = @transform_4, window_bounds = array<i64: 1, 128>}, {pipeline_mode = #tpu.pipeline_mode<synchronous>, transform_indices = @transform_5, window_bounds = array<i64: 128, 128>}, {pipeline_mode = #tpu.pipeline_mode<synchronous>, transform_indices = @transform_6, window_bounds = array<i64: 1, 128>}, {transform_indices = @transform_7, window_bounds = array<i64: 8, 128>}]} {
    %c0 = arith.constant 0 : index
    %c0_0 = arith.constant 0 : index
    %0 = vector.load %arg1[%c0, %c0_0] : memref<8x32xf32, #tpu.memory_space<vmem>>, vector<8x32xf32>
    %1 = arith.truncf %0 : vector<8x32xf32> to vector<8x32xbf16>
    %c0_1 = arith.constant 0 : index
    %c0_2 = arith.constant 0 : index
    %2 = vector.load %arg2[%c0_1, %c0_2] : memref<32x128xbf16, #tpu.memory_space<vmem>>, vector<32x128xbf16>
    %cst = arith.constant dense<0.000000e+00> : vector<8x128xf32>
    %3 = tpu.matmul %1, %2, %cst {dimension_numbers = #tpu.dot_dimension_numbers<[1], [0], [0], [1], [0, 0, 1, 1], [], []>} : vector<8x32xbf16>, vector<32x128xbf16>, vector<8x128xf32> -> vector<8x128xf32>
    %c0_3 = arith.constant 0 : index
    %c0_4 = arith.constant 0 : index
    %4 = vector.load %arg3[%c0_3, %c0_4] : memref<1x128xf32, #tpu.memory_space<vmem>>, vector<1x128xf32>
    %5 = vector.broadcast %4 : vector<1x128xf32> to vector<8x128xf32>
    %6 = arith.addf %3, %5 : vector<8x128xf32>
    %cst_5 = arith.constant 0.000000e+00 : f32
    %7 = vector.broadcast %cst_5 : f32 to vector<8x128xf32>
    %8 = arith.maximumf %6, %7 : vector<8x128xf32>
    %9 = arith.truncf %8 : vector<8x128xf32> to vector<8x128xbf16>
    %c0_6 = arith.constant 0 : index
    %c0_7 = arith.constant 0 : index
    %10 = vector.load %arg4[%c0_6, %c0_7] : memref<128x128xbf16, #tpu.memory_space<vmem>>, vector<128x128xbf16>
    %cst_8 = arith.constant dense<0.000000e+00> : vector<8x128xf32>
    %11 = tpu.matmul %9, %10, %cst_8 {dimension_numbers = #tpu.dot_dimension_numbers<[1], [0], [0], [1], [0, 0, 1, 1], [], []>} : vector<8x128xbf16>, vector<128x128xbf16>, vector<8x128xf32> -> vector<8x128xf32>
    %c0_9 = arith.constant 0 : index
    %c0_10 = arith.constant 0 : index
    %12 = vector.load %arg5[%c0_9, %c0_10] : memref<1x128xf32, #tpu.memory_space<vmem>>, vector<1x128xf32>
    %13 = vector.broadcast %12 : vector<1x128xf32> to vector<8x128xf32>
    %14 = arith.addf %11, %13 : vector<8x128xf32>
    %cst_11 = arith.constant 0.000000e+00 : f32
    %15 = vector.broadcast %cst_11 : f32 to vector<8x128xf32>
    %16 = arith.maximumf %14, %15 : vector<8x128xf32>
    %17 = arith.truncf %16 : vector<8x128xf32> to vector<8x128xbf16>
    %c0_12 = arith.constant 0 : index
    %c0_13 = arith.constant 0 : index
    %18 = vector.load %arg6[%c0_12, %c0_13] : memref<128x128xbf16, #tpu.memory_space<vmem>>, vector<128x128xbf16>
    %cst_14 = arith.constant dense<0.000000e+00> : vector<8x128xf32>
    %19 = tpu.matmul %17, %18, %cst_14 {dimension_numbers = #tpu.dot_dimension_numbers<[1], [0], [0], [1], [0, 0, 1, 1], [], []>} : vector<8x128xbf16>, vector<128x128xbf16>, vector<8x128xf32> -> vector<8x128xf32>
    %c0_15 = arith.constant 0 : index
    %c0_16 = arith.constant 0 : index
    %20 = vector.load %arg7[%c0_15, %c0_16] : memref<1x128xf32, #tpu.memory_space<vmem>>, vector<1x128xf32>
    %21 = vector.broadcast %20 : vector<1x128xf32> to vector<8x128xf32>
    %22 = arith.addf %19, %21 : vector<8x128xf32>
    %cst_17 = arith.constant 5.000000e-01 : f32
    %23 = vector.broadcast %cst_17 : f32 to vector<8x128xf32>
    %24 = arith.mulf %23, %22 : vector<8x128xf32>
    %25 = math.tanh %24 : vector<8x128xf32>
    %cst_18 = arith.constant 5.000000e-01 : f32
    %26 = vector.broadcast %cst_18 : f32 to vector<8x128xf32>
    %27 = arith.mulf %26, %25 : vector<8x128xf32>
    %cst_19 = arith.constant 5.000000e-01 : f32
    %28 = vector.broadcast %cst_19 : f32 to vector<8x128xf32>
    %29 = arith.addf %27, %28 : vector<8x128xf32>
    %c0_20 = arith.constant 0 : index
    %c0_21 = arith.constant 0 : index
    %30 = vector.load %arg8[%c0_20, %c0_21] : memref<8x128xf32, #tpu.memory_space<vmem>>, vector<8x128xf32>
    tpu.vector_store %arg8[%c0_20, %c0_21], %29 {strides = array<i32>} : memref<8x128xf32, #tpu.memory_space<vmem>>, vector<8x128xf32>,
    return
  }
  func.func @transform_0(%arg0: i32) -> (i32, i32) {
    %c0_i32 = arith.constant 0 : i32
    %c0_i32_0 = arith.constant 0 : i32
    return %arg0, %c0_i32 : i32, i32
  }
  func.func @transform_1(%arg0: i32) -> (i32, i32) {
    %c0_i32 = arith.constant 0 : i32
    %c0_i32_0 = arith.constant 0 : i32
    %c0_i32_1 = arith.constant 0 : i32
    return %c0_i32, %c0_i32_0 : i32, i32
  }
  func.func @transform_2(%arg0: i32) -> (i32, i32) {
    %c0_i32 = arith.constant 0 : i32
    %c0_i32_0 = arith.constant 0 : i32
    %c0_i32_1 = arith.constant 0 : i32
    return %c0_i32, %c0_i32_0 : i32, i32
  }
  func.func @transform_3(%arg0: i32) -> (i32, i32) {
    %c0_i32 = arith.constant 0 : i32
    %c0_i32_0 = arith.constant 0 : i32
    %c0_i32_1 = arith.constant 0 : i32
    return %c0_i32, %c0_i32_0 : i32, i32
  }
  func.func @transform_4(%arg0: i32) -> (i32, i32) {
    %c0_i32 = arith.constant 0 : i32
    %c0_i32_0 = arith.constant 0 : i32
    %c0_i32_1 = arith.constant 0 : i32
    return %c0_i32, %c0_i32_0 : i32, i32
  }
  func.func @transform_5(%arg0: i32) -> (i32, i32) {
    %c0_i32 = arith.constant 0 : i32
    %c0_i32_0 = arith.constant 0 : i32
    %c0_i32_1 = arith.constant 0 : i32
    return %c0_i32, %c0_i32_0 : i32, i32
  }
  func.func @transform_6(%arg0: i32) -> (i32, i32) {
    %c0_i32 = arith.constant 0 : i32
    %c0_i32_0 = arith.constant 0 : i32
    %c0_i32_1 = arith.constant 0 : i32
    return %c0_i32, %c0_i32_0 : i32, i32
  }
  func.func @transform_7(%arg0: i32) -> (i32, i32) {
    %c0_i32 = arith.constant 0 : i32
    %c0_i32_0 = arith.constant 0 : i32
    return %arg0, %c0_i32 : i32, i32
  }
}

</mosaic_0001>

<bundles_post_ra>
// kernel: tpu_custom_call.1
= control target key start
LH: loop header
LB: loop body
LE: loop exit
PB: predicated region body
PF: predicated region fallthrough
CT: control target
= control target key end

     0   :  { %12 = vsyncpa [#allocation3], 0  ;;  %s1501_s0 = inlined_call_operand.hbm [shape: f32[16,32], index: 0, kind: input, shape index: {}]   ;;  %s1502_s1 = inlined_call_operand.hbm [shape: bf16[32,128], index: 1, kind: input, shape index: {}]   ;;  %s1503_s2 = inlined_call_operand.vmem [shape: f32[1,128], index: 2, kind: input, shape index: {}]   ;;  %s1504_s3 = inlined_call_operand.hbm [shape: bf16[128,128], index: 3, kind: input, shape index: {}]   ;;  %s1505_s4 = inlined_call_operand.vmem [shape: f32[1,128], index: 4, kind: input, shape index: {}]   ;;  %s1506_s5 = inlined_call_operand.hbm [shape: bf16[128,128], index: 5, kind: input, shape index: {}]   ;;  %s1507_s6 = inlined_call_operand.vmem [shape: f32[1,128], index: 6, kind: input, shape index: {}]   ;;  %s1508_s7 = inlined_call_operand.hbm [shape: f32[16,128], index: 7, kind: output, shape index: {}]  }
   0x1   :  { %14 = vsyncpa [#allocation3 + $0x1], 0 }
   0x2   :  { %15 = vsyncpa [#allocation6], 0 }
   0x3   :  { %16 = vsyncpa [#allocation9], 0 }
   0x4   :  { %17 = vsyncpa [#allocation4], 0 }
   0x5   :  { %19 = vsyncpa [#allocation4 + $0x1], 0  ;;  %s1201_s24 = smov 0   ;;  %s1203_s25 = smov 0  }
   0x6   :  { %s1205_s26 = smov 0   ;;  %s1207_s27 = smov 0  }
   0x7 LB: > { %s1222_s28 = sadd.s32 4294967295, %s1150_s27   ;;  %s752_s29 = sadd.s32 4294967294, %s1150_s27   ;;  %s1150_s27 = sphi %s1207_s27, %s1534_s27   ;;  %s1146_s26 = sphi %s1205_s26, %s1533_s26   ;;  %s1142_s25 = sphi %s1203_s25, %s1532_s25   ;;  %s1138_s24 = sphi %s1201_s24, %s1531_s24  }
   0x8   : > { %p45_p0 = scmp.ne.s32.totalorder %s1142_s25, %s1138_s24  ;;  %p1509_p1 = scmp.eq.s32.totalorder %s1222_s28, 0 }
   0x9   : > { %p201_p3 = scmp.eq.s32.totalorder %s752_s29, 1  ;;  %p753_p5 = scmp.ge.s32.totalorder %s1150_s27, 1 }
   0xa   : > { %p1231_p4 = por %p1509_p1, %p45_p0  ;;  %p208_p7 = scmp.lt.s32.totalorder %s1150_s27, 3 }
   0xb   : > { %p1236_p6 = por %p201_p3, %p45_p0  ;;  %s1152_s10 = smov [#allocation5]  }
   0xc   : > { %s1513_s30 = scalar_select %p1231_p4, 1, 0 }
   0xd   : > { %s1514_s8 = scalar_select %p1236_p6, 1, 0 }
   0xe   : > { %p1241_p8 = pnand %p753_p5, %p208_p7  ;;  %s220_s11 = sshll.u32 %s1152_s10, 4  ;;  %s1245_s11 = int_to_ptr.vmem [resolvable:$true] %s220_s11 }
   0xf   : > { %1515 = sst [smem:[#allocation15_spill]] %s1514_s8  ;;  %s1153_s13 = smov [#allocation7]  }
  0x10   : > { %s1516_s9 = scalar_select %p1241_p8, 1, 0 }
  0x11   : > { %p877_p9 = pneg %p1241_p8  ;;  %s236_s14 = sshll.u32 %s1153_s13, 4  ;;  %s1256_s14 = int_to_ptr.vmem [resolvable:$true] %s236_s14 }
  0x12   : > { %s1154_s15 = smov [#allocation8]   ;;  %s962_s19 = scalar_lea.hbm %s1502_s1, 256 }
  0x13   : > { %p1252_p11 = pnand %p877_p9, %p1509_p1  ;;  %s1258_s16 = sshll.u32 %s1154_s15, 4  ;;  %s253_s16 = int_to_ptr.vmem [resolvable:$true] %s1258_s16 }
  0x14   : > { %p963_p12 = scmp.ne.s32.totalorder %s1502_s1, %s962_s19  ;;  %p969_p5 = scmp.lt.u32.totalorder %s962_s19, %s1502_s1 }
  0x15   : > { %p1268_p13 = pneg %p1252_p11 }
  0x17   : > { %p965_p0 = pnand %p1268_p13, %p963_p12 }
  0x19   : > { %p966_p3 = pneg %p965_p0 }
  0x1b   : > { %p971_p7 = pnand %p969_p5, %p966_p3 }
  0x1d   : > { %974 = shalt.err (!%p971_p7)
}
  0x1e   : > { %s975_s10 = scalar_lea.vmem %s1245_s11, 256  ;;  %p983_p2 = scmp.lt.s32.totalorder %s1245_s11, %s1245_s11 }
  0x1f   : > { %p976_p9 = scmp.ne.s32.totalorder %s1245_s11, %s975_s10  ;;  %p984_p6 = scmp.lt.s32.totalorder %s975_s10, %s975_s10 }
  0x21   : > { %p978_p10 = pnand %p976_p9, %p1268_p13  ;;  %p985_p12 = por %p984_p6, %p983_p2 }
  0x23   : > { %p979_p1 = pneg %p978_p10 }
  0x25   : > { %p986_p0 = pnand %p985_p12, %p979_p1 }
  0x27   : > { %989 = shalt.err (!%p986_p0)
}
  0x28   : > { %s1155_s13 = smov 64   ;;  %s1156_s15 = smov 4  }
  0x29   : > { %880 = dma.hbm_to_vmem [thread:$0]  (!%p1252_p11), %s1502_s1, 256, %s1245_s11, [#allocation6], %s1155_s13, %s1155_s13, %s1156_s15  }
  0x2a   : > { %s990_s21 = scalar_lea.hbm %s1504_s3, 1024 }
  0x2b   : > { %p991_p1 = scmp.ne.s32.totalorder %s1504_s3, %s990_s21  ;;  %p997_p10 = scmp.lt.u32.totalorder %s990_s21, %s1504_s3 }
  0x2d   : > { %p993_p2 = pnand %p991_p1, %p1268_p13 }
  0x2f   : > { %p994_p6 = pneg %p993_p2 }
  0x31   : > { %p999_p3 = pnand %p997_p10, %p994_p6 }
  0x33   : > { %1002 = shalt.err (!%p999_p3)
}
  0x34   : > { %s1003_s11 = scalar_lea.vmem %s1256_s14, 1024  ;;  %p1011_p12 = scmp.lt.s32.totalorder %s1256_s14, %s1256_s14 }
  0x35   : > { %p1004_p5 = scmp.ne.s32.totalorder %s1256_s14, %s1003_s11  ;;  %p1012_p0 = scmp.lt.s32.totalorder %s1003_s11, %s1003_s11 }
  0x37   : > { %p1006_p7 = pnand %p1004_p5, %p1268_p13  ;;  %p1013_p1 = por %p1012_p0, %p1011_p12 }
  0x39   : > { %p1007_p9 = pneg %p1006_p7 }
  0x3b   : > { %p1014_p2 = pnand %p1013_p1, %p1007_p9 }
  0x3d   : > { %1017 = shalt.err (!%p1014_p2)
}
  0x3e   : > { %883 = dma.hbm_to_vmem [thread:$0]  (!%p1252_p11), %s1504_s3, 1024, %s1256_s14, [#allocation6], %s1155_s13, %s1155_s13, %s1156_s15  }
  0x3f   : > { %s1018_s20 = scalar_lea.hbm %s1506_s5, 1024 }
  0x40   : > { %p1019_p6 = scmp.ne.s32.totalorder %s1506_s5, %s1018_s20  ;;  %p1025_p5 = scmp.lt.u32.totalorder %s1018_s20, %s1506_s5 }
  0x42   : > { %p1021_p10 = pnand %p1019_p6, %p1268_p13 }
  0x44   : > { %p1022_p3 = pneg %p1021_p10 }
  0x46   : > { %p1027_p7 = pnand %p1025_p5, %p1022_p3 }
  0x48   : > { %1030 = shalt.err (!%p1027_p7)
}
  0x49   : > { %s1031_s11 = scalar_lea.vmem %s253_s16, 1024  ;;  %p1039_p1 = scmp.lt.s32.totalorder %s253_s16, %s253_s16 }
  0x4a   : > { %p1032_p9 = scmp.ne.s32.totalorder %s253_s16, %s1031_s11  ;;  %p1040_p2 = scmp.lt.s32.totalorder %s1031_s11, %s1031_s11 }
  0x4c   : > { %p1034_p12 = pnand %p1032_p9, %p1268_p13  ;;  %p1041_p4 = por %p1040_p2, %p1039_p1 }
  0x4e   : > { %p1035_p0 = pneg %p1034_p12 }
  0x50   : > { %p1042_p8 = pnand %p1041_p4, %p1035_p0 }
  0x52   : > { %1045 = shalt.err (!%p1042_p8)
}
  0x53   : > { %886 = dma.hbm_to_vmem [thread:$0]  (!%p1252_p11), %s1506_s5, 1024, %s253_s16, [#allocation9], %s1155_s13, %s1155_s13, %s1156_s15  }
  0x54   : > { %s1341_s22 = sadd.s32 1, %s1150_s27   ;;  %s32_s17 = sadd.s32 1, %s1146_s26 }
  0x55   : > { %s29_s12 = ssub.s32 %s1150_s27, %s1341_s22  ;;  %p39_p8 = scmp.ne.s32.totalorder %s1146_s26, %s1142_s25 }
  0x56   : > { %p30_p4 = scmp.eq.s32.totalorder %s29_s12, 0  ;;  %p40_p13 = scmp.eq.s32.totalorder %s1150_s27, 0 }
  0x57   : > { %p898_p6 = scmp.lt.s32.totalorder %s1150_s27, 2  ;;  %p1519_p3 = scmp.eq.s32.totalorder %s1222_s28, 1 }
  0x58   : > { %s1351_s18 = scalar_select %p30_p4, %s1146_s26, %s32_s17  }
  0x59   : > { %p41_p10 = por %p40_p13, %p39_p8  ;;  %p1355_p5 = por %p1519_p3, %p39_p8 }
  0x5a   : > { %s269_s20 = sand.u32 1, %s1146_s26   ;;  %s759_s21 = sshll.u32 %s1150_s27, 7 }
  0x5b   : > { %s758_s16 = sshll.u32 %s269_s20, 3  ;;  %s1364_s23 = scalar_lea.hbm %s1501_s0, %s759_s21 }
  0x5c   : > { %s273_s29 = scalar_lea.vmem [#allocation2], %s758_s16  ;;  %p1366_p11 = pnand %p898_p6, %p41_p10 }
  0x5d   : > { %s280_s10 = sshll.u32 %s273_s29, 4  ;;  %s270_s14 = scalar_lea.sflag [#allocation3], %s269_s20  ;;  %s1370_s10 = int_to_ptr.vmem [resolvable:$true] %s280_s10 }
  0x5e   : > { %s1046_s8 = scalar_lea.hbm %s1364_s23, 128  ;;  %p1048_p9 = pneg %p1366_p11 }
  0x5f   : > { %p1047_p7 = scmp.ne.s32.totalorder %s1364_s23, %s1046_s8  ;;  %s1051_s21 = scalar_lea.hbm %s1501_s0, 256 }
  0x60   : > { %p1052_p1 = scmp.lt.u32.totalorder %s1364_s23, %s1501_s0  ;;  %p1053_p2 = scmp.lt.u32.totalorder %s1051_s21, %s1046_s8 }
  0x61   : > { %p1049_p12 = pnand %p1048_p9, %p1047_p7  ;;  %p1055_p8 = scmp.lt.u32.totalorder %s1046_s8, %s1364_s23 }
  0x62   : > { %p1054_p4 = por %p1053_p2, %p1052_p1 }
  0x63   : > { %p1050_p0 = pneg %p1049_p12 }
  0x64   : > { %p1056_p13 = por %p1055_p8, %p1054_p4 }
  0x66   : > { %p1057_p6 = pnand %p1056_p13, %p1050_p0 }
  0x68   : > { %1060 = shalt.err (!%p1057_p6)
}
  0x69   : > { %s1061_s20 = scalar_lea.vmem %s1370_s10, 128  ;;  %s1157_s15 = smov [#allocation2]  }
  0x6a   : > { %p1062_p10 = scmp.ne.s32.totalorder %s1370_s10, %s1061_s20  ;;  %s1066_s29 = sshll.u32 %s1157_s15, 4  ;;  %s1067_s29 = int_to_ptr.vmem [resolvable:$false] %s1066_s29 }
  0x6b   : > { %s1068_s12 = scalar_lea.vmem %s1067_s29, 256  ;;  %p1069_p12 = scmp.lt.s32.totalorder %s1370_s10, %s1067_s29 }
  0x6c   : > { %p1064_p3 = pnand %p1062_p10, %p1048_p9  ;;  %p1070_p1 = scmp.lt.s32.totalorder %s1068_s12, %s1061_s20 }
  0x6e   : > { %p1065_p7 = pneg %p1064_p3  ;;  %p1071_p2 = por %p1070_p1, %p1069_p12 }
  0x70   : > { %p1072_p4 = pnand %p1071_p2, %p1065_p7 }
  0x72   : > { %1075 = shalt.err (!%p1072_p4)
}
  0x73   : > { %890 = dma.hbm_to_vmem [thread:$0]  (!%p1366_p11), %s1364_s23, 128, %s1370_s10, %s270_s14  }
  0x74   : > { %p1522_p0 = scmp.ne.s32.totalorder %s1516_s9, 0 }
  0x75   : > { %s1400_s8 = sand.u32 (!%p1522_p0), 1, %s1142_s25   ;;  %p1523_p9 = scmp.ne.s32.totalorder (!%p1522_p0), %s1513_s30, 0 }
  0x76   : > { %289 = sbr.rel (%p1522_p0) target bundleno = 824 (0x338), region = 48  ;;  %s761_s17 = sshll.u32 (!%p1522_p0), %s1400_s8, 3 }
  0x77   : > { %s292_s21 = scalar_lea.sflag (!%p1522_p0), [#allocation3], %s1400_s8  ;;  %s295_s16 = scalar_lea.vmem (!%p1522_p0), [#allocation2], %s761_s17 }
  0x7d   : > { %1121 = dma.done.wait (%p1523_p9), %s292_s21, 128  }
  0x7e   : > { %1123 = vsyncadd (%p1523_p9), %s292_s21, 4294967168  ;;  %p1524_p11 = scmp.eq.s32.totalorder %s1222_s28, 0 }
  0x80   : > { %1125 = dma.done.wait (%p1524_p11), [#allocation6], 1280   ;;  %p1525_p8 = pmov %p1524_p11 }
  0x82   : > { %1127 = vsyncadd (%p1525_p8), [#allocation6], 4294966016  ;;  %p1526_p13 = pmov %p1525_p8 }
  0x83   : > { %p1527_p6 = pmov %p1525_p8 }
  0x84   : > { %1129 = dma.done.wait (%p1526_p13), [#allocation9], 1024  }
  0x85   : > { %1131 = vsyncadd (%p1527_p6), [#allocation9], 4294966272  ;;  %v1158_v0 = vmov 0.0   ;;  %vm1159_vm0 = vmmov 0   ;;  %v942_v1 = vld [vmem:[#allocation5] sm:$0xff]   ;;  %v943_v2 = vld [vmem:[#allocation5 + $0x8] sm:$0xff]  }
  0x86   : > { %813 = vmatprep.subr.bf16.mxu0 %v1158_v0  ;;  %817 = vmatprep.mubr.msk.bf16.mxu0 %vm1159_vm0, %v1158_v0  ;;  %v339_v3 = vld [vmem:[%s295_s16] sm:$0xff]  ;;  %vm364_vm1 = vcmask 261120   ;;  %v946_v7 = vld [vmem:[#allocation7 + $0x10] sm:$0xff]   ;;  %v947_v8 = vld [vmem:[#allocation7 + $0x18] sm:$0xff]   ;;  %s789_s13 = sshll.u32 %s1222_s28, 7  ;;  %s337_s20 = scalar_lea.vmem [#allocation10], %s761_s17 }
  0x87   : > { %821 = vmatprep.subr.bf16.mxu1 %v1158_v0  ;;  %837 = vmatprep.mubr.msk.bf16.mxu1 %vm1159_vm0, %v1158_v0  ;;  %v944_v4 = vld [vmem:[#allocation7] sm:$0xff]   ;;  %v340_v5 = vpack.c.bf16 %v339_v3, %v339_v3  ;;  %v945_v6 = vld [vmem:[#allocation7 + $0x8] sm:$0xff]   ;;  %v950_v11 = vld [vmem:[#allocation7 + $0x30] sm:$0xff]   ;;  %s653_s15 = sshll.u32 %s337_s20, 4  ;;  %s1457_s21 = scalar_lea.hbm %s1508_s7, %s789_s13  ;;  %s1459_s15 = int_to_ptr.vmem [resolvable:$true] %s653_s15 }
  0x88   : > { %814 = vmatpush3.bf16.msra.mxu0 %v942_v1  ;;  %822 = vmatpush3.bf16.msra.mxu1 %v944_v4  ;;  %v948_v9 = vld [vmem:[#allocation7 + $0x20] sm:$0xff]   ;;  %v949_v10 = vld [vmem:[#allocation7 + $0x28] sm:$0xff]   ;;  %v951_v12 = vld [vmem:[#allocation7 + $0x38] sm:$0xff]   ;;  %s640_s16 = scalar_lea.sflag [#allocation4], %s1400_s8  ;;  %s1076_s30 = scalar_lea.vmem %s1459_s15, 128 }
  0x89   : > { %815 = vmatprep.subr.bf16.mxu0 %v1158_v0  ;;  %823 = vmatprep.subr.bf16.mxu1 %v1158_v0  ;;  %v952_v13 = vld [vmem:[#allocation8] sm:$0xff]   ;;  %v953_v14 = vld [vmem:[#allocation8 + $0x8] sm:$0xff]   ;;  %v954_v15 = vld [vmem:[#allocation8 + $0x10] sm:$0xff]   ;;  %p1077_p10 = scmp.ne.s32.totalorder %s1459_s15, %s1076_s30  ;;  %s1160_s28 = smov [#allocation10]  }
  0x8a   : > { %v955_v16 = vld [vmem:[#allocation8 + $0x18] sm:$0xff]   ;;  %v956_v17 = vld [vmem:[#allocation8 + $0x20] sm:$0xff]   ;;  %v957_v18 = vld [vmem:[#allocation8 + $0x28] sm:$0xff]   ;;  %s1080_s17 = sshll.u32 %s1160_s28, 4  ;;  %s1081_s17 = int_to_ptr.vmem [resolvable:$false] %s1080_s17 }
  0x8b   : > { %v766_v19 = vld [vmem:[%s1503_s2] ss:$0 sm:$0xff]  ;;  %v958_v27 = vld [vmem:[#allocation8 + $0x30] sm:$0xff]   ;;  %v959_v28 = vld [vmem:[#allocation8 + $0x38] sm:$0xff]   ;;  %p1078_p3 = pnand %p1077_p10, %p1355_p5  ;;  %s1082_s9 = scalar_lea.vmem %s1081_s17, 256 }
  0x8c   : > { %816 = vmatpush3.bf16.msra.mxu0 %v943_v2  ;;  %824 = vmatpush3.bf16.msra.mxu1 %v945_v6  ;;  %v770_v29 = vld [vmem:[%s1505_s4] ss:$0 sm:$0xff]  ;;  %p1083_p12 = scmp.lt.s32.totalorder %s1459_s15, %s1081_s17  ;;  %p1084_p1 = scmp.lt.s32.totalorder %s1082_s9, %s1076_s30 }
  0x8d   : > { %841 = vmatprep.subr.bf16.mxu0 %v1158_v0  ;;  %825 = vmatprep.subr.bf16.mxu1 %v1158_v0  ;;  %v779_v37 = vld [vmem:[%s1507_s6] ss:$0 sm:$0xff]  ;;  %p1079_p7 = pneg %p1078_p3 }
  0x8e   : > { %p1085_p2 = por %p1084_p1, %p1083_p12 }
  0x8f   : > { %818 = vmatmul.mubr.msk.bf16.vlgmr.msra.gmra.mrb[0].mxu0 %vm364_vm1, %v340_v5 }
  0x90   : > { %857 = vmatprep.mubr.msk.bf16.mxu0 %vm1159_vm0, %v1158_v0  ;;  %826 = vmatpush3.bf16.msra.mxu1 %v946_v7  ;;  %p1086_p4 = pnand %p1085_p2, %p1079_p7 }
  0x91   : > { %827 = vmatprep.subr.bf16.mxu1 %v1158_v0  ;;  %842 = vmatpush3.bf16.msra.mxu0 %v952_v13 }
  0x92   : > { %843 = vmatprep.subr.bf16.mxu0 %v1158_v0 }
  0x94   : > { %828 = vmatpush3.bf16.msra.mxu1 %v947_v8 }
  0x95   : > { %829 = vmatprep.subr.bf16.mxu1 %v1158_v0  ;;  %844 = vmatpush3.bf16.msra.mxu0 %v953_v14 }
  0x96   : > { %845 = vmatprep.subr.bf16.mxu0 %v1158_v0 }
  0x98   : > { %830 = vmatpush3.bf16.msra.mxu1 %v948_v9 }
  0x99   : > { %831 = vmatprep.subr.bf16.mxu1 %v1158_v0  ;;  %846 = vmatpush3.bf16.msra.mxu0 %v954_v15 }
  0x9a   : > { %847 = vmatprep.subr.bf16.mxu0 %v1158_v0 }
  0x9c   : > { %832 = vmatpush3.bf16.msra.mxu1 %v949_v10 }
  0x9d   : > { %833 = vmatprep.subr.bf16.mxu1 %v1158_v0  ;;  %848 = vmatpush3.bf16.msra.mxu0 %v955_v16 }
  0x9e   : > { %849 = vmatprep.subr.bf16.mxu0 %v1158_v0 }
  0xa0   : > { %834 = vmatpush3.bf16.msra.mxu1 %v950_v11 }
  0xa1   : > { %835 = vmatprep.subr.bf16.mxu1 %v1158_v0  ;;  %850 = vmatpush3.bf16.msra.mxu0 %v956_v17 }
  0xa2   : > { %851 = vmatprep.subr.bf16.mxu0 %v1158_v0 }
  0xa4   : > { %836 = vmatpush3.bf16.msra.mxu1 %v951_v12 }
  0xa5   : > { %852 = vmatpush3.bf16.msra.mxu0 %v957_v18 }
  0xa6   : > { %853 = vmatprep.subr.bf16.mxu0 %v1158_v0 }
  0xa9   : > { %854 = vmatpush3.bf16.msra.mxu0 %v958_v27 }
  0xaa   : > { %855 = vmatprep.subr.bf16.mxu0 %v1158_v0 }
  0xad   : > { %856 = vmatpush3.bf16.msra.mxu0 %v959_v28 }
 0x162   : > { %v402_v20 = vpop.f32.mrb[0].mxu0 }
 0x163   : > { %v403_v21 = vadd.f32 %v766_v19, %v402_v20  ;;  %v819_v22 = vpop.f32.mrb[1].mxu0 }
 0x164   : > { %v405_v23 = vpop.f32.mrb[2].mxu0 }
 0x165   : > { %v408_v24 = vmax.f32 %v403_v21, 0.0  ;;  %v820_v25 = vpop.f32.mrb[3].mxu0 }
 0x167   : > { %v409_v26 = vpack.c.bf16 %v408_v24, %v408_v24 }
 0x169   : > { %838 = vmatmul.mubr.bf16.vlgmr.msra.gmra.mrb[0].mxu1 %v409_v26 }
 0x23c   : > { %v515_v30 = vpop.f32.mrb[0].mxu1 }
 0x23d   : > { %v516_v31 = vadd.f32 %v770_v29, %v515_v30  ;;  %v839_v32 = vpop.f32.mrb[1].mxu1 }
 0x23e   : > { %v518_v33 = vpop.f32.mrb[2].mxu1 }
 0x23f   : > { %v521_v34 = vmax.f32 %v516_v31, 0.0  ;;  %v840_v35 = vpop.f32.mrb[3].mxu1 }
 0x241   : > { %v522_v36 = vpack.c.bf16 %v521_v34, %v521_v34 }
 0x243   : > { %858 = vmatmul.mubr.bf16.vlgmr.msra.gmra.mrb[4].mxu0 %v522_v36 }
 0x316   : > { %v628_v38 = vpop.f32.mrb[4].mxu0 }
 0x317   : > { %v629_v39 = vadd.f32 %v779_v37, %v628_v38  ;;  %v859_v40 = vpop.f32.mrb[5].mxu0 }
 0x318   : > { %v631_v41 = vpop.f32.mrb[6].mxu0 }
 0x319   : > { %v634_v42 = vmul.f32 0.5, %v629_v39  ;;  %v860_v43 = vpop.f32.mrb[7].mxu0 }
 0x31b   : > { %960 = vtanh.f32 %v634_v42 }
 0x325   : > { %v961_v44 = vpop.eup %960 }
 0x326   : > { %v636_v45 = vmul.f32 0.5, %v961_v44 }
 0x328   : > { %v637_v46 = vadd.f32 0.5, %v636_v45 }
 0x32a   : > { %638 = vst [vmem:[%s337_s20] sm:$0xff] %v637_v46 }
 0x32b   : > { %1089 = shalt.err (!%p1086_p4)
}
 0x32c   : > { %s1090_s8 = scalar_lea.hbm %s1457_s21, 128  ;;  %s1094_s11 = scalar_lea.hbm %s1508_s7, 256 }
 0x32d   : > { %p1091_p0 = scmp.ne.s32.totalorder %s1457_s21, %s1090_s8  ;;  %p1095_p8 = scmp.lt.u32.totalorder %s1457_s21, %s1508_s7 }
 0x32e   : > { %p1096_p13 = scmp.lt.u32.totalorder %s1094_s11, %s1090_s8  ;;  %p1098_p10 = scmp.lt.u32.totalorder %s1090_s8, %s1457_s21 }
 0x32f   : > { %p1092_p9 = pnand %p1091_p0, %p1355_p5 }
 0x330   : > { %p1097_p6 = por %p1096_p13, %p1095_p8 }
 0x331   : > { %p1093_p11 = pneg %p1092_p9 }
 0x332   : > { %p1099_p3 = por %p1098_p10, %p1097_p6 }
 0x334   : > { %p1100_p7 = pnand %p1099_p3, %p1093_p11 }
 0x336   : > { %1103 = shalt.err (!%p1100_p7)
}
 0x337   : > { %875 = dma.vmem_to_hbm [thread:$0]  (%p1355_p5), %s1459_s15, 128, %s1457_s21, %s640_s16  }
 0x338 PF: > { %s1528_s20 = sld [smem:[#allocation15_spill]]  ;;  %s665_s29 = sand.u32 1, %s1138_s24  }
 0x339   : > { %p1530_p1 = scmp.ge.s32.totalorder %s1150_s27, 2  ;;  %s666_s12 = scalar_lea.sflag [#allocation4], %s665_s29 }
 0x33e   : > { %p1529_p12 = scmp.ne.s32.totalorder %s1528_s20, 0 }
 0x340   : > { %p892_p2 = pnand %p1530_p1, %p1529_p12 }
 0x342   : > { %1133 = dma.done.wait (!%p892_p2), %s666_s12, 128  }
 0x343   : > { %1135 = vsyncadd (!%p892_p2), %s666_s12, 4294967168  ;;  %p22_p4 = scmp.ge.s32.totalorder %s1341_s22, 4   ;;  %s1531_s24 = smov %s1142_s25 }
 0x344   : > { %s1532_s25 = smov %s1146_s26  ;;  %s1533_s26 = smov %s1351_s18 }
 0x345   : > { %s1534_s27 = smov %s1341_s22  ;;  %24 = sbr.rel (!%p22_p4) target bundleno = 7 (0x7), region = 105 }
 0x34c   :  { %671 = vsyncpa [#allocation3], 1 }
 0x34d   :  { %673 = vsyncpa [#allocation3 + $0x1], 1 }
 0x34e   :  { %674 = vsyncpa [#allocation6], 1 }
 0x34f   :  { %675 = vsyncpa [#allocation9], 1 }
 0x350   :  { %676 = vsyncpa [#allocation4], 1 }
 0x351   :  { %678 = vsyncpa [#allocation4 + $0x1], 1 }

// kernel: tpu_custom_call.1
= control target key start
LH: loop header
LB: loop body
LE: loop exit
PB: predicated region body
PF: predicated region fallthrough
CT: control target
= control target key end

     0   :  { %12 = vsyncpa [#allocation3], 0  ;;  %s1501_s0 = inlined_call_operand.hbm [shape: f32[16,32], index: 0, kind: input, shape index: {}]   ;;  %s1502_s1 = inlined_call_operand.hbm [shape: bf16[32,128], index: 1, kind: input, shape index: {}]   ;;  %s1503_s2 = inlined_call_operand.vmem [shape: f32[1,128], index: 2, kind: input, shape index: {}]   ;;  %s1504_s3 = inlined_call_operand.hbm [shape: bf16[128,128], index: 3, kind: input, shape index: {}]   ;;  %s1505_s4 = inlined_call_operand.vmem [shape: f32[1,128], index: 4, kind: input, shape index: {}]   ;;  %s1506_s5 = inlined_call_operand.hbm [shape: bf16[128,128], index: 5, kind: input, shape index: {}]   ;;  %s1507_s6 = inlined_call_operand.vmem [shape: f32[1,128], index: 6, kind: input, shape index: {}]   ;;  %s1508_s7 = inlined_call_operand.hbm [shape: f32[16,128], index: 7, kind: output, shape index: {}]  }
   0x1   :  { %14 = vsyncpa [#allocation3 + $0x1], 0 }
   0x2   :  { %15 = vsyncpa [#allocation6], 0 }
   0x3   :  { %16 = vsyncpa [#allocation9], 0 }
   0x4   :  { %17 = vsyncpa [#allocation4], 0 }
   0x5   :  { %19 = vsyncpa [#allocation4 + $0x1], 0  ;;  %s1201_s24 = smov 0   ;;  %s1203_s25 = smov 0  }
   0x6   :  { %s1205_s26 = smov 0   ;;  %s1207_s27 = smov 0  }
   0x7 LB: > { %s1222_s28 = sadd.s32 4294967295, %s1150_s27   ;;  %s752_s29 = sadd.s32 4294967294, %s1150_s27   ;;  %s1150_s27 = sphi %s1207_s27, %s1534_s27   ;;  %s1146_s26 = sphi %s1205_s26, %s1533_s26   ;;  %s1142_s25 = sphi %s1203_s25, %s1532_s25   ;;  %s1138_s24 = sphi %s1201_s24, %s1531_s24  }
   0x8   : > { %p45_p0 = scmp.ne.s32.totalorder %s1142_s25, %s1138_s24  ;;  %p1509_p1 = scmp.eq.s32.totalorder %s1222_s28, 0 }
   0x9   : > { %p201_p3 = scmp.eq.s32.totalorder %s752_s29, 1  ;;  %p753_p5 = scmp.ge.s32.totalorder %s1150_s27, 1 }
   0xa   : > { %p1231_p4 = por %p1509_p1, %p45_p0  ;;  %p208_p7 = scmp.lt.s32.totalorder %s1150_s27, 3 }
   0xb   : > { %p1236_p6 = por %p201_p3, %p45_p0  ;;  %s1152_s10 = smov [#allocation5]  }
   0xc   : > { %s1513_s30 = scalar_select %p1231_p4, 1, 0 }
   0xd   : > { %s1514_s8 = scalar_select %p1236_p6, 1, 0 }
   0xe   : > { %p1241_p8 = pnand %p753_p5, %p208_p7  ;;  %s220_s11 = sshll.u32 %s1152_s10, 4  ;;  %s1245_s11 = int_to_ptr.vmem [resolvable:$true] %s220_s11 }
   0xf   : > { %1515 = sst [smem:[#allocation15_spill]] %s1514_s8  ;;  %s1153_s13 = smov [#allocation7]  }
  0x10   : > { %s1516_s9 = scalar_select %p1241_p8, 1, 0 }
  0x11   : > { %p877_p9 = pneg %p1241_p8  ;;  %s236_s14 = sshll.u32 %s1153_s13, 4  ;;  %s1256_s14 = int_to_ptr.vmem [resolvable:$true] %s236_s14 }
  0x12   : > { %s1154_s15 = smov [#allocation8]   ;;  %s962_s19 = scalar_lea.hbm %s1502_s1, 256 }
  0x13   : > { %p1252_p11 = pnand %p877_p9, %p1509_p1  ;;  %s1258_s16 = sshll.u32 %s1154_s15, 4  ;;  %s253_s16 = int_to_ptr.vmem [resolvable:$true] %s1258_s16 }
  0x14   : > { %p963_p12 = scmp.ne.s32.totalorder %s1502_s1, %s962_s19  ;;  %p969_p5 = scmp.lt.u32.totalorder %s962_s19, %s1502_s1 }
  0x15   : > { %p1268_p13 = pneg %p1252_p11 }
  0x17   : > { %p965_p0 = pnand %p1268_p13, %p963_p12 }
  0x19   : > { %p966_p3 = pneg %p965_p0 }
  0x1b   : > { %p971_p7 = pnand %p969_p5, %p966_p3 }
  0x1d   : > { %974 = shalt.err (!%p971_p7)
}
  0x1e   : > { %s975_s10 = scalar_lea.vmem %s1245_s11, 256  ;;  %p983_p2 = scmp.lt.s32.totalorder %s1245_s11, %s1245_s11 }
  0x1f   : > { %p976_p9 = scmp.ne.s32.totalorder %s1245_s11, %s975_s10  ;;  %p984_p6 = scmp.lt.s32.totalorder %s975_s10, %s975_s10 }
  0x21   : > { %p978_p10 = pnand %p976_p9, %p1268_p13  ;;  %p985_p12 = por %p984_p6, %p983_p2 }
  0x23   : > { %p979_p1 = pneg %p978_p10 }
  0x25   : > { %p986_p0 = pnand %p985_p12, %p979_p1 }
  0x27   : > { %989 = shalt.err (!%p986_p0)
}
  0x28   : > { %s1155_s13 = smov 64   ;;  %s1156_s15 = smov 4  }
  0x29   : > { %880 = dma.hbm_to_vmem [thread:$0]  (!%p1252_p11), %s1502_s1, 256, %s1245_s11, [#allocation6], %s1155_s13, %s1155_s13, %s1156_s15  }
  0x2a   : > { %s990_s21 = scalar_lea.hbm %s1504_s3, 1024 }
  0x2b   : > { %p991_p1 = scmp.ne.s32.totalorder %s1504_s3, %s990_s21  ;;  %p997_p10 = scmp.lt.u32.totalorder %s990_s21, %s1504_s3 }
  0x2d   : > { %p993_p2 = pnand %p991_p1, %p1268_p13 }
  0x2f   : > { %p994_p6 = pneg %p993_p2 }
  0x31   : > { %p999_p3 = pnand %p997_p10, %p994_p6 }
  0x33   : > { %1002 = shalt.err (!%p999_p3)
}
  0x34   : > { %s1003_s11 = scalar_lea.vmem %s1256_s14, 1024  ;;  %p1011_p12 = scmp.lt.s32.totalorder %s1256_s14, %s1256_s14 }
  0x35   : > { %p1004_p5 = scmp.ne.s32.totalorder %s1256_s14, %s1003_s11  ;;  %p1012_p0 = scmp.lt.s32.totalorder %s1003_s11, %s1003_s11 }
  0x37   : > { %p1006_p7 = pnand %p1004_p5, %p1268_p13  ;;  %p1013_p1 = por %p1012_p0, %p1011_p12 }
  0x39   : > { %p1007_p9 = pneg %p1006_p7 }
  0x3b   : > { %p1014_p2 = pnand %p1013_p1, %p1007_p9 }
  0x3d   : > { %1017 = shalt.err (!%p1014_p2)
}
  0x3e   : > { %883 = dma.hbm_to_vmem [thread:$0]  (!%p1252_p11), %s1504_s3, 1024, %s1256_s14, [#allocation6], %s1155_s13, %s1155_s13, %s1156_s15  }
  0x3f   : > { %s1018_s20 = scalar_lea.hbm %s1506_s5, 1024 }
  0x40   : > { %p1019_p6 = scmp.ne.s32.totalorder %s1506_s5, %s1018_s20  ;;  %p1025_p5 = scmp.lt.u32.totalorder %s1018_s20, %s1506_s5 }
  0x42   : > { %p1021_p10 = pnand %p1019_p6, %p1268_p13 }
  0x44   : > { %p1022_p3 = pneg %p1021_p10 }
  0x46   : > { %p1027_p7 = pnand %p1025_p5, %p1022_p3 }
  0x48   : > { %1030 = shalt.err (!%p1027_p7)
}
  0x49   : > { %s1031_s11 = scalar_lea.vmem %s253_s16, 1024  ;;  %p1039_p1 = scmp.lt.s32.totalorder %s253_s16, %s253_s16 }
  0x4a   : > { %p1032_p9 = scmp.ne.s32.totalorder %s253_s16, %s1031_s11  ;;  %p1040_p2 = scmp.lt.s32.totalorder %s1031_s11, %s1031_s11 }
  0x4c   : > { %p1034_p12 = pnand %p1032_p9, %p1268_p13  ;;  %p1041_p4 = por %p1040_p2, %p1039_p1 }
  0x4e   : > { %p1035_p0 = pneg %p1034_p12 }
  0x50   : > { %p1042_p8 = pnand %p1041_p4, %p1035_p0 }
  0x52   : > { %1045 = shalt.err (!%p1042_p8)
}
  0x53   : > { %886 = dma.hbm_to_vmem [thread:$0]  (!%p1252_p11), %s1506_s5, 1024, %s253_s16, [#allocation9], %s1155_s13, %s1155_s13, %s1156_s15  }
  0x54   : > { %s1341_s22 = sadd.s32 1, %s1150_s27   ;;  %s32_s17 = sadd.s32 1, %s1146_s26 }
  0x55   : > { %s29_s12 = ssub.s32 %s1150_s27, %s1341_s22  ;;  %p39_p8 = scmp.ne.s32.totalorder %s1146_s26, %s1142_s25 }
  0x56   : > { %p30_p4 = scmp.eq.s32.totalorder %s29_s12, 0  ;;  %p40_p13 = scmp.eq.s32.totalorder %s1150_s27, 0 }
  0x57   : > { %p898_p6 = scmp.lt.s32.totalorder %s1150_s27, 2  ;;  %p1519_p3 = scmp.eq.s32.totalorder %s1222_s28, 1 }
  0x58   : > { %s1351_s18 = scalar_select %p30_p4, %s1146_s26, %s32_s17  }
  0x59   : > { %p41_p10 = por %p40_p13, %p39_p8  ;;  %p1355_p5 = por %p1519_p3, %p39_p8 }
  0x5a   : > { %s269_s20 = sand.u32 1, %s1146_s26   ;;  %s759_s21 = sshll.u32 %s1150_s27, 7 }
  0x5b   : > { %s758_s16 = sshll.u32 %s269_s20, 3  ;;  %s1364_s23 = scalar_lea.hbm %s1501_s0, %s759_s21 }
  0x5c   : > { %s273_s29 = scalar_lea.vmem [#allocation2], %s758_s16  ;;  %p1366_p11 = pnand %p898_p6, %p41_p10 }
  0x5d   : > { %s280_s10 = sshll.u32 %s273_s29, 4  ;;  %s270_s14 = scalar_lea.sflag [#allocation3], %s269_s20  ;;  %s1370_s10 = int_to_ptr.vmem [resolvable:$true] %s280_s10 }
  0x5e   : > { %s1046_s8 = scalar_lea.hbm %s1364_s23, 128  ;;  %p1048_p9 = pneg %p1366_p11 }
  0x5f   : > { %p1047_p7 = scmp.ne.s32.totalorder %s1364_s23, %s1046_s8  ;;  %s1051_s21 = scalar_lea.hbm %s1501_s0, 256 }
  0x60   : > { %p1052_p1 = scmp.lt.u32.totalorder %s1364_s23, %s1501_s0  ;;  %p1053_p2 = scmp.lt.u32.totalorder %s1051_s21, %s1046_s8 }
  0x61   : > { %p1049_p12 = pnand %p1048_p9, %p1047_p7  ;;  %p1055_p8 = scmp.lt.u32.totalorder %s1046_s8, %s1364_s23 }
  0x62   : > { %p1054_p4 = por %p1053_p2, %p1052_p1 }
  0x63   : > { %p1050_p0 = pneg %p1049_p12 }
  0x64   : > { %p1056_p13 = por %p1055_p8, %p1054_p4 }
  0x66   : > { %p1057_p6 = pnand %p1056_p13, %p1050_p0 }
  0x68   : > { %1060 = shalt.err (!%p1057_p6)
}
  0x69   : > { %s1061_s20 = scalar_lea.vmem %s1370_s10, 128  ;;  %s1157_s15 = smov [#allocation2]  }
  0x6a   : > { %p1062_p10 = scmp.ne.s32.totalorder %s1370_s10, %s1061_s20  ;;  %s1066_s29 = sshll.u32 %s1157_s15, 4  ;;  %s1067_s29 = int_to_ptr.vmem [resolvable:$false] %s1066_s29 }
  0x6b   : > { %s1068_s12 = scalar_lea.vmem %s1067_s29, 256  ;;  %p1069_p12 = scmp.lt.s32.totalorder %s1370_s10, %s1067_s29 }
  0x6c   : > { %p1064_p3 = pnand %p1062_p10, %p1048_p9  ;;  %p1070_p1 = scmp.lt.s32.totalorder %s1068_s12, %s1061_s20 }
  0x6e   : > { %p1065_p7 = pneg %p1064_p3  ;;  %p1071_p2 = por %p1070_p1, %p1069_p12 }
  0x70   : > { %p1072_p4 = pnand %p1071_p2, %p1065_p7 }
  0x72   : > { %1075 = shalt.err (!%p1072_p4)
}
  0x73   : > { %890 = dma.hbm_to_vmem [thread:$0]  (!%p1366_p11), %s1364_s23, 128, %s1370_s10, %s270_s14  }
  0x74   : > { %p1522_p0 = scmp.ne.s32.totalorder %s1516_s9, 0 }
  0x75   : > { %s1400_s8 = sand.u32 (!%p1522_p0), 1, %s1142_s25   ;;  %p1523_p9 = scmp.ne.s32.totalorder (!%p1522_p0), %s1513_s30, 0 }
  0x76   : > { %289 = sbr.rel (%p1522_p0) target bundleno = 824 (0x338), region = 48  ;;  %s761_s17 = sshll.u32 (!%p1522_p0), %s1400_s8, 3 }
  0x77   : > { %s292_s21 = scalar_lea.sflag (!%p1522_p0), [#allocation3], %s1400_s8  ;;  %s295_s16 = scalar_lea.vmem (!%p1522_p0), [#allocation2], %s761_s17 }
  0x7d   : > { %1121 = dma.done.wait (%p1523_p9), %s292_s21, 128  }
  0x7e   : > { %1123 = vsyncadd (%p1523_p9), %s292_s21, 4294967168  ;;  %p1524_p11 = scmp.eq.s32.totalorder %s1222_s28, 0 }
  0x80   : > { %1125 = dma.done.wait (%p1524_p11), [#allocation6], 1280   ;;  %p1525_p8 = pmov %p1524_p11 }
  0x82   : > { %1127 = vsyncadd (%p1525_p8), [#allocation6], 4294966016  ;;  %p1526_p13 = pmov %p1525_p8 }
  0x83   : > { %p1527_p6 = pmov %p1525_p8 }
  0x84   : > { %1129 = dma.done.wait (%p1526_p13), [#allocation9], 1024  }
  0x85   : > { %1131 = vsyncadd (%p1527_p6), [#allocation9], 4294966272  ;;  %v1158_v0 = vmov 0.0   ;;  %vm1159_vm0 = vmmov 0   ;;  %v942_v1 = vld [vmem:[#allocation5] sm:$0xff]   ;;  %v943_v2 = vld [vmem:[#allocation5 + $0x8] sm:$0xff]  }
  0x86   : > { %813 = vmatprep.subr.bf16.mxu0 %v1158_v0  ;;  %817 = vmatprep.mubr.msk.bf16.mxu0 %vm1159_vm0, %v1158_v0  ;;  %v339_v3 = vld [vmem:[%s295_s16] sm:$0xff]  ;;  %vm364_vm1 = vcmask 261120   ;;  %v946_v7 = vld [vmem:[#allocation7 + $0x10] sm:$0xff]   ;;  %v947_v8 = vld [vmem:[#allocation7 + $0x18] sm:$0xff]   ;;  %s789_s13 = sshll.u32 %s1222_s28, 7  ;;  %s337_s20 = scalar_lea.vmem [#allocation10], %s761_s17 }
  0x87   : > { %821 = vmatprep.subr.bf16.mxu1 %v1158_v0  ;;  %837 = vmatprep.mubr.msk.bf16.mxu1 %vm1159_vm0, %v1158_v0  ;;  %v944_v4 = vld [vmem:[#allocation7] sm:$0xff]   ;;  %v340_v5 = vpack.c.bf16 %v339_v3, %v339_v3  ;;  %v945_v6 = vld [vmem:[#allocation7 + $0x8] sm:$0xff]   ;;  %v950_v11 = vld [vmem:[#allocation7 + $0x30] sm:$0xff]   ;;  %s653_s15 = sshll.u32 %s337_s20, 4  ;;  %s1457_s21 = scalar_lea.hbm %s1508_s7, %s789_s13  ;;  %s1459_s15 = int_to_ptr.vmem [resolvable:$true] %s653_s15 }
  0x88   : > { %814 = vmatpush3.bf16.msra.mxu0 %v942_v1  ;;  %822 = vmatpush3.bf16.msra.mxu1 %v944_v4  ;;  %v948_v9 = vld [vmem:[#allocation7 + $0x20] sm:$0xff]   ;;  %v949_v10 = vld [vmem:[#allocation7 + $0x28] sm:$0xff]   ;;  %v951_v12 = vld [vmem:[#allocation7 + $0x38] sm:$0xff]   ;;  %s640_s16 = scalar_lea.sflag [#allocation4], %s1400_s8  ;;  %s1076_s30 = scalar_lea.vmem %s1459_s15, 128 }
  0x89   : > { %815 = vmatprep.subr.bf16.mxu0 %v1158_v0  ;;  %823 = vmatprep.subr.bf16.mxu1 %v1158_v0  ;;  %v952_v13 = vld [vmem:[#allocation8] sm:$0xff]   ;;  %v953_v14 = vld [vmem:[#allocation8 + $0x8] sm:$0xff]   ;;  %v954_v15 = vld [vmem:[#allocation8 + $0x10] sm:$0xff]   ;;  %p1077_p10 = scmp.ne.s32.totalorder %s1459_s15, %s1076_s30  ;;  %s1160_s28 = smov [#allocation10]  }
  0x8a   : > { %v955_v16 = vld [vmem:[#allocation8 + $0x18] sm:$0xff]   ;;  %v956_v17 = vld [vmem:[#allocation8 + $0x20] sm:$0xff]   ;;  %v957_v18 = vld [vmem:[#allocation8 + $0x28] sm:$0xff]   ;;  %s1080_s17 = sshll.u32 %s1160_s28, 4  ;;  %s1081_s17 = int_to_ptr.vmem [resolvable:$false] %s1080_s17 }
  0x8b   : > { %v766_v19 = vld [vmem:[%s1503_s2] ss:$0 sm:$0xff]  ;;  %v958_v27 = vld [vmem:[#allocation8 + $0x30] sm:$0xff]   ;;  %v959_v28 = vld [vmem:[#allocation8 + $0x38] sm:$0xff]   ;;  %p1078_p3 = pnand %p1077_p10, %p1355_p5  ;;  %s1082_s9 = scalar_lea.vmem %s1081_s17, 256 }
  0x8c   : > { %816 = vmatpush3.bf16.msra.mxu0 %v943_v2  ;;  %824 = vmatpush3.bf16.msra.mxu1 %v945_v6  ;;  %v770_v29 = vld [vmem:[%s1505_s4] ss:$0 sm:$0xff]  ;;  %p1083_p12 = scmp.lt.s32.totalorder %s1459_s15, %s1081_s17  ;;  %p1084_p1 = scmp.lt.s32.totalorder %s1082_s9, %s1076_s30 }
  0x8d   : > { %841 = vmatprep.subr.bf16.mxu0 %v1158_v0  ;;  %825 = vmatprep.subr.bf16.mxu1 %v1158_v0  ;;  %v779_v37 = vld [vmem:[%s1507_s6] ss:$0 sm:$0xff]  ;;  %p1079_p7 = pneg %p1078_p3 }
  0x8e   : > { %p1085_p2 = por %p1084_p1, %p1083_p12 }
  0x8f   : > { %818 = vmatmul.mubr.msk.bf16.vlgmr.msra.gmra.mrb[0].mxu0 %vm364_vm1, %v340_v5 }
  0x90   : > { %857 = vmatprep.mubr.msk.bf16.mxu0 %vm1159_vm0, %v1158_v0  ;;  %826 = vmatpush3.bf16.msra.mxu1 %v946_v7  ;;  %p1086_p4 = pnand %p1085_p2, %p1079_p7 }
  0x91   : > { %827 = vmatprep.subr.bf16.mxu1 %v1158_v0  ;;  %842 = vmatpush3.bf16.msra.mxu0 %v952_v13 }
  0x92   : > { %843 = vmatprep.subr.bf16.mxu0 %v1158_v0 }
  0x94   : > { %828 = vmatpush3.bf16.msra.mxu1 %v947_v8 }
  0x95   : > { %829 = vmatprep.subr.bf16.mxu1 %v1158_v0  ;;  %844 = vmatpush3.bf16.msra.mxu0 %v953_v14 }
  0x96   : > { %845 = vmatprep.subr.bf16.mxu0 %v1158_v0 }
  0x98   : > { %830 = vmatpush3.bf16.msra.mxu1 %v948_v9 }
  0x99   : > { %831 = vmatprep.subr.bf16.mxu1 %v1158_v0  ;;  %846 = vmatpush3.bf16.msra.mxu0 %v954_v15 }
  0x9a   : > { %847 = vmatprep.subr.bf16.mxu0 %v1158_v0 }
  0x9c   : > { %832 = vmatpush3.bf16.msra.mxu1 %v949_v10 }
  0x9d   : > { %833 = vmatprep.subr.bf16.mxu1 %v1158_v0  ;;  %848 = vmatpush3.bf16.msra.mxu0 %v955_v16 }
  0x9e   : > { %849 = vmatprep.subr.bf16.mxu0 %v1158_v0 }
  0xa0   : > { %834 = vmatpush3.bf16.msra.mxu1 %v950_v11 }
  0xa1   : > { %835 = vmatprep.subr.bf16.mxu1 %v1158_v0  ;;  %850 = vmatpush3.bf16.msra.mxu0 %v956_v17 }
  0xa2   : > { %851 = vmatprep.subr.bf16.mxu0 %v1158_v0 }
  0xa4   : > { %836 = vmatpush3.bf16.msra.mxu1 %v951_v12 }
  0xa5   : > { %852 = vmatpush3.bf16.msra.mxu0 %v957_v18 }
  0xa6   : > { %853 = vmatprep.subr.bf16.mxu0 %v1158_v0 }
  0xa9   : > { %854 = vmatpush3.bf16.msra.mxu0 %v958_v27 }
  0xaa   : > { %855 = vmatprep.subr.bf16.mxu0 %v1158_v0 }
  0xad   : > { %856 = vmatpush3.bf16.msra.mxu0 %v959_v28 }
 0x162   : > { %v402_v20 = vpop.f32.mrb[0].mxu0 }
 0x163   : > { %v403_v21 = vadd.f32 %v766_v19, %v402_v20  ;;  %v819_v22 = vpop.f32.mrb[1].mxu0 }
 0x164   : > { %v405_v23 = vpop.f32.mrb[2].mxu0 }
 0x165   : > { %v408_v24 = vmax.f32 %v403_v21, 0.0  ;;  %v820_v25 = vpop.f32.mrb[3].mxu0 }
 0x167   : > { %v409_v26 = vpack.c.bf16 %v408_v24, %v408_v24 }
 0x169   : > { %838 = vmatmul.mubr.bf16.vlgmr.msra.gmra.mrb[0].mxu1 %v409_v26 }
 0x23c   : > { %v515_v30 = vpop.f32.mrb[0].mxu1 }
 0x23d   : > { %v516_v31 = vadd.f32 %v770_v29, %v515_v30  ;;  %v839_v32 = vpop.f32.mrb[1].mxu1 }
 0x23e   : > { %v518_v33 = vpop.f32.mrb[2].mxu1 }
 0x23f   : > { %v521_v34 = vmax.f32 %v516_v31, 0.0  ;;  %v840_v35 = vpop.f32.mrb[3].mxu1 }
 0x241   : > { %v522_v36 = vpack.c.bf16 %v521_v34, %v521_v34 }
 0x243   : > { %858 = vmatmul.mubr.bf16.vlgmr.msra.gmra.mrb[4].mxu0 %v522_v36 }
 0x316   : > { %v628_v38 = vpop.f32.mrb[4].mxu0 }
 0x317   : > { %v629_v39 = vadd.f32 %v779_v37, %v628_v38  ;;  %v859_v40 = vpop.f32.mrb[5].mxu0 }
 0x318   : > { %v631_v41 = vpop.f32.mrb[6].mxu0 }
 0x319   : > { %v634_v42 = vmul.f32 0.5, %v629_v39  ;;  %v860_v43 = vpop.f32.mrb[7].mxu0 }
 0x31b   : > { %960 = vtanh.f32 %v634_v42 }
 0x325   : > { %v961_v44 = vpop.eup %960 }
 0x326   : > { %v636_v45 = vmul.f32 0.5, %v961_v44 }
 0x328   : > { %v637_v46 = vadd.f32 0.5, %v636_v45 }
 0x32a   : > { %638 = vst [vmem:[%s337_s20] sm:$0xff] %v637_v46 }
 0x32b   : > { %1089 = shalt.err (!%p1086_p4)
}
 0x32c   : > { %s1090_s8 = scalar_lea.hbm %s1457_s21, 128  ;;  %s1094_s11 = scalar_lea.hbm %s1508_s7, 256 }
 0x32d   : > { %p1091_p0 = scmp.ne.s32.totalorder %s1457_s21, %s1090_s8  ;;  %p1095_p8 = scmp.lt.u32.totalorder %s1457_s21, %s1508_s7 }
 0x32e   : > { %p1096_p13 = scmp.lt.u32.totalorder %s1094_s11, %s1090_s8  ;;  %p1098_p10 = scmp.lt.u32.totalorder %s1090_s8, %s1457_s21 }
 0x32f   : > { %p1092_p9 = pnand %p1091_p0, %p1355_p5 }
 0x330   : > { %p1097_p6 = por %p1096_p13, %p1095_p8 }
 0x331   : > { %p1093_p11 = pneg %p1092_p9 }
 0x332   : > { %p1099_p3 = por %p1098_p10, %p1097_p6 }
 0x334   : > { %p1100_p7 = pnand %p1099_p3, %p1093_p11 }
 0x336   : > { %1103 = shalt.err (!%p1100_p7)
}
 0x337   : > { %875 = dma.vmem_to_hbm [thread:$0]  (%p1355_p5), %s1459_s15, 128, %s1457_s21, %s640_s16  }
 0x338 PF: > { %s1528_s20 = sld [smem:[#allocation15_spill]]  ;;  %s665_s29 = sand.u32 1, %s1138_s24  }
 0x339   : > { %p1530_p1 = scmp.ge.s32.totalorder %s1150_s27, 2  ;;  %s666_s12 = scalar_lea.sflag [#allocation4], %s665_s29 }
 0x33e   : > { %p1529_p12 = scmp.ne.s32.totalorder %s1528_s20, 0 }
 0x340   : > { %p892_p2 = pnand %p1530_p1, %p1529_p12 }
 0x342   : > { %1133 = dma.done.wait (!%p892_p2), %s666_s12, 128  }
 0x343   : > { %1135 = vsyncadd (!%p892_p2), %s666_s12, 4294967168  ;;  %p22_p4 = scmp.ge.s32.totalorder %s1341_s22, 4   ;;  %s1531_s24 = smov %s1142_s25 }
 0x344   : > { %s1532_s25 = smov %s1146_s26  ;;  %s1533_s26 = smov %s1351_s18 }
 0x345   : > { %s1534_s27 = smov %s1341_s22  ;;  %24 = sbr.rel (!%p22_p4) target bundleno = 7 (0x7), region = 105 }
 0x34c   :  { %671 = vsyncpa [#allocation3], 1 }
 0x34d   :  { %673 = vsyncpa [#allocation3 + $0x1], 1 }
 0x34e   :  { %674 = vsyncpa [#allocation6], 1 }
 0x34f   :  { %675 = vsyncpa [#allocation9], 1 }
 0x350   :  { %676 = vsyncpa [#allocation4], 1 }
 0x351   :  { %678 = vsyncpa [#allocation4 + $0x1], 1 }

</bundles_post_ra>
